<compile_context>
chip_gen: v6e
topology: v6e:2x2x1
jax: 0.10.0
libtpu: 0.0.40
codegen_flags: <defaults>
</compile_context>

<pallas_src>
import jax
import jax.numpy as jnp
from jax.experimental import pallas as pl
from jax.experimental.pallas import tpu as pltpu


def _pitf_kernel(ops_ref,   # VMEM (4, K, TB): [u, d_tu, it, d_ti], batch on lanes
                 o_ref):    # VMEM (1, TB): per-sample scores (lane-dense)
    u = ops_ref[0]          # (K, TB)
    d_tu = ops_ref[1]
    it = ops_ref[2]
    d_ti = ops_ref[3]
    s = u * d_tu + it * d_ti
    o_ref[...] = jnp.sum(s, axis=0, keepdims=True)


def single_pitf_forward(x, user_vecs, item_vecs, tag_user_vecs, tag_item_vecs,
                        *, block_b=2048):
    """Pallas implementation of SinglePITF.forward.

    x:               (B, 4) int32 indices [user, item, pos_tag, neg_tag]
    user_vecs:       (numUser, K) f32
    item_vecs:       (numItem, K) f32
    tag_user_vecs:   (numTag,  K) f32
    tag_item_vecs:   (numTag,  K) f32
    returns:         (B,) f32 scores
    """
    if x.ndim == 1:                      # mirrors the PyTorch x.view(1, len(x))
        x = x.reshape(1, -1)
    x = x.astype(jnp.int32)
    B = x.shape[0]
    K = user_vecs.shape[1]

    # Wrapper-side row gather + pos/neg difference (layout plumbing fused into
    # one XLA gather/sub/transpose fusion; all remaining arithmetic stays in
    # the kernel).  Transposed to (K, B): K on sublanes, batch on lanes.
    u = jnp.take(user_vecs, x[:, 0], axis=0).astype(jnp.float32)
    it = jnp.take(item_vecs, x[:, 1], axis=0).astype(jnp.float32)
    d_tu = (jnp.take(tag_user_vecs, x[:, 2], axis=0)
            - jnp.take(tag_user_vecs, x[:, 3], axis=0)).astype(jnp.float32)
    d_ti = (jnp.take(tag_item_vecs, x[:, 2], axis=0)
            - jnp.take(tag_item_vecs, x[:, 3], axis=0)).astype(jnp.float32)

    # Single stacked operand: (4, K, B).
    ops = jnp.stack([u.T, d_tu.T, it.T, d_ti.T], axis=0)

    # Tile the batch along the lane axis.  Small batches use one full-extent
    # tile (always a legal block); large batches use tiles of `block_b` lanes
    # (a multiple of 128), zero-padded to the tile boundary.
    tb = block_b if B >= block_b else B
    n_tiles = pl.cdiv(B, tb)
    Bp = n_tiles * tb
    if Bp != B:
        ops = jnp.pad(ops, ((0, 0), (0, 0), (0, Bp - B)))

    grid_spec = pltpu.PrefetchScalarGridSpec(
        num_scalar_prefetch=0,
        grid=(n_tiles,),
        in_specs=[pl.BlockSpec((4, K, tb), lambda i: (0, 0, i))],
        out_specs=pl.BlockSpec((1, tb), lambda i: (0, i)),
    )

    scores = pl.pallas_call(
        _pitf_kernel,
        out_shape=jax.ShapeDtypeStruct((1, Bp), jnp.float32),
        grid_spec=grid_spec,
        compiler_params=pltpu.CompilerParams(
            dimension_semantics=("parallel",)),
    )(ops)

    return scores[0, :B]


def single_pitf_reference(x, user_vecs, item_vecs, tag_user_vecs, tag_item_vecs):
    """Pure-JAX reference matching the PyTorch forward."""
    if x.ndim == 1:
        x = x.reshape(1, -1)
    u = user_vecs[x[:, 0]]
    it = item_vecs[x[:, 1]]
    tu = tag_user_vecs[x[:, 2]]
    ti = tag_item_vecs[x[:, 2]]
    ntu = tag_user_vecs[x[:, 3]]
    nti = tag_item_vecs[x[:, 3]]
    return (jnp.sum(u * tu, axis=1) + jnp.sum(it * ti, axis=1)
            - (jnp.sum(u * ntu, axis=1) + jnp.sum(it * nti, axis=1)))


def _make_inputs(key, numUser, numItem, numTag, K, init_st, B):
    k_u, k_i, k_tu, k_ti, k_idx = jax.random.split(key, 5)
    user_vecs = init_st * jax.random.normal(k_u, (numUser, K), jnp.float32)
    item_vecs = init_st * jax.random.normal(k_i, (numItem, K), jnp.float32)
    tag_user_vecs = init_st * jax.random.normal(k_tu, (numTag, K), jnp.float32)
    tag_item_vecs = init_st * jax.random.normal(k_ti, (numTag, K), jnp.float32)
    x = jnp.stack([
        jax.random.randint(jax.random.fold_in(k_idx, 0), (B,), 0, numUser),
        jax.random.randint(jax.random.fold_in(k_idx, 1), (B,), 0, numItem),
        jax.random.randint(jax.random.fold_in(k_idx, 2), (B,), 0, numTag),
        jax.random.randint(jax.random.fold_in(k_idx, 3), (B,), 0, numTag),
    ], axis=1).astype(jnp.int32)
    return x, user_vecs, item_vecs, tag_user_vecs, tag_item_vecs


if __name__ == "__main__":
    # Module hyper-params (SinglePITF(numUser, numItem, numTag, k, init_st)).
    numUser, numItem, numTag, K = 16, 16, 16, 32
    init_st = 0.1
    key = jax.random.PRNGKey(0)

    # Small batch (single full-extent tile path).
    B = 8
    x, uv, iv, tuv, tiv = _make_inputs(key, numUser, numItem, numTag, K,
                                       init_st, B)
    out = single_pitf_forward(x, uv, iv, tuv, tiv)
    out = jax.block_until_ready(out)
    ref = single_pitf_reference(x, uv, iv, tuv, tiv)
    assert out.shape == (B,)
    assert jnp.allclose(out, ref, atol=1e-5, rtol=1e-5), (out, ref)

    # Larger batch exercising the multi-tile + padding path
    # (600 samples, block_b=256 here -> 3 tiles; production default is 2048).
    B2 = 600
    x2, uv2, iv2, tuv2, tiv2 = _make_inputs(jax.random.fold_in(key, 7),
                                            numUser, numItem, numTag, K,
                                            init_st, B2)
    out2 = single_pitf_forward(x2, uv2, iv2, tuv2, tiv2, block_b=256)
    out2 = jax.block_until_ready(out2)
    ref2 = single_pitf_reference(x2, uv2, iv2, tuv2, tiv2)
    assert out2.shape == (B2,)
    assert jnp.allclose(out2, ref2, atol=1e-5, rtol=1e-5)

    # Default (large-tile) path on the same data.
    out3 = jax.block_until_ready(single_pitf_forward(x2, uv2, iv2, tuv2, tiv2))
    assert jnp.allclose(out3, ref2, atol=1e-5, rtol=1e-5)

    print("KERNEL_OK")
</pallas_src>

<mosaic_0001>
module attributes {stable_mosaic.version = 11 : i64} {
  func.func @_pitf_kernel(%arg0: i32, %arg1: memref<4x32x8xf32, #tpu.memory_space<vmem>>, %arg2: memref<1x8xf32, #tpu.memory_space<vmem>>) attributes {dimension_semantics = [#tpu.dimension_semantics<parallel>], iteration_bounds = array<i64: 1>, scalar_prefetch = 0 : i64, scratch_operands = 0 : i64, tpu.core_type = #tpu.core_type<tc>, window_params = [{transform_indices = @transform_0, window_bounds = array<i64: 4, 32, 8>}, {transform_indices = @transform_1, window_bounds = array<i64: 1, 8>}]} {
    %c0 = arith.constant 0 : index
    %c0_0 = arith.constant 0 : index
    %c0_1 = arith.constant 0 : index
    %0 = vector.load %arg1[%c0, %c0_0, %c0_1] : memref<4x32x8xf32, #tpu.memory_space<vmem>>, vector<1x32x8xf32>
    %1 = vector.shape_cast %0 : vector<1x32x8xf32> to vector<32x8xf32>
    %c1 = arith.constant 1 : index
    %c0_2 = arith.constant 0 : index
    %c0_3 = arith.constant 0 : index
    %2 = vector.load %arg1[%c1, %c0_2, %c0_3] : memref<4x32x8xf32, #tpu.memory_space<vmem>>, vector<1x32x8xf32>
    %3 = vector.shape_cast %2 : vector<1x32x8xf32> to vector<32x8xf32>
    %c2 = arith.constant 2 : index
    %c0_4 = arith.constant 0 : index
    %c0_5 = arith.constant 0 : index
    %4 = vector.load %arg1[%c2, %c0_4, %c0_5] : memref<4x32x8xf32, #tpu.memory_space<vmem>>, vector<1x32x8xf32>
    %5 = vector.shape_cast %4 : vector<1x32x8xf32> to vector<32x8xf32>
    %c3 = arith.constant 3 : index
    %c0_6 = arith.constant 0 : index
    %c0_7 = arith.constant 0 : index
    %6 = vector.load %arg1[%c3, %c0_6, %c0_7] : memref<4x32x8xf32, #tpu.memory_space<vmem>>, vector<1x32x8xf32>
    %7 = vector.shape_cast %6 : vector<1x32x8xf32> to vector<32x8xf32>
    %8 = arith.mulf %1, %3 : vector<32x8xf32>
    %9 = arith.mulf %5, %7 : vector<32x8xf32>
    %10 = arith.addf %8, %9 : vector<32x8xf32>
    %cst = arith.constant dense<0.000000e+00> : vector<8xf32>
    %11 = vector.multi_reduction <add>, %10, %cst [0] : vector<32x8xf32> to vector<8xf32>
    %12 = vector.shape_cast %11 : vector<8xf32> to vector<1x8xf32>
    %c0_8 = arith.constant 0 : index
    %c0_9 = arith.constant 0 : index
    %13 = vector.load %arg2[%c0_8, %c0_9] : memref<1x8xf32, #tpu.memory_space<vmem>>, vector<1x8xf32>
    tpu.vector_store %arg2[%c0_8, %c0_9], %12 {strides = array<i32>} : memref<1x8xf32, #tpu.memory_space<vmem>>, vector<1x8xf32>,
    return
  }
  func.func @transform_0(%arg0: i32) -> (i32, i32, i32) {
    %c0_i32 = arith.constant 0 : i32
    %c0_i32_0 = arith.constant 0 : i32
    %c0_i32_1 = arith.constant 0 : i32
    return %c0_i32, %c0_i32_0, %arg0 : i32, i32, i32
  }
  func.func @transform_1(%arg0: i32) -> (i32, i32) {
    %c0_i32 = arith.constant 0 : i32
    %c0_i32_0 = arith.constant 0 : i32
    return %c0_i32, %arg0 : i32, i32
  }
}

</mosaic_0001>

<bundles_post_ra>
// kernel: tpu_custom_call.1
= control target key start
LH: loop header
LB: loop body
LE: loop exit
PB: predicated region body
PF: predicated region fallthrough
CT: control target
= control target key end

     0   :  { %s167_s0 = inlined_call_operand.vmem [shape: f32[4,32,8], index: 0, kind: input, shape index: {}]   ;;  %s168_s1 = inlined_call_operand.hbm [shape: f32[1,8], index: 1, kind: output, shape index: {}]  }
   0x1   :  { %v9_v0 = vld [vmem:[%s167_s0] sm:$0xff]  ;;  %v10_v1 = vld [vmem:[%s167_s0 + $0x8] sm:$0xff]  ;;  %v11_v2 = vld [vmem:[%s167_s0 + $0x10] sm:$0xff] }
   0x2   :  { %v12_v3 = vld [vmem:[%s167_s0 + $0x18] sm:$0xff]  ;;  %v70_v4 = vld [vmem:[%s167_s0 + $0x20] sm:$0xff]  ;;  %v71_v5 = vld [vmem:[%s167_s0 + $0x28] sm:$0xff] }
   0x3   :  { %v72_v6 = vld [vmem:[%s167_s0 + $0x30] sm:$0xff]  ;;  %v73_v7 = vld [vmem:[%s167_s0 + $0x38] sm:$0xff]  ;;  %v74_v8 = vld [vmem:[%s167_s0 + $0x40] sm:$0xff]  ;;  %v28_v12 = vmul.f32 %v70_v4, %v9_v0  ;;  %v29_v13 = vmul.f32 %v71_v5, %v10_v1 }
   0x4   :  { %v75_v9 = vld [vmem:[%s167_s0 + $0x48] sm:$0xff]  ;;  %v76_v10 = vld [vmem:[%s167_s0 + $0x50] sm:$0xff]  ;;  %v77_v11 = vld [vmem:[%s167_s0 + $0x58] sm:$0xff]  ;;  %v30_v14 = vmul.f32 %v72_v6, %v11_v2  ;;  %v31_v18 = vmul.f32 %v73_v7, %v12_v3 }
   0x5   :  { %v78_v15 = vld [vmem:[%s167_s0 + $0x60] sm:$0xff]  ;;  %v79_v16 = vld [vmem:[%s167_s0 + $0x68] sm:$0xff]  ;;  %v80_v17 = vld [vmem:[%s167_s0 + $0x70] sm:$0xff] }
   0x6   :  { %v81_v19 = vld [vmem:[%s167_s0 + $0x78] sm:$0xff]  ;;  %v32_v20 = vmul.f32 %v78_v15, %v74_v8  ;;  %v33_v21 = vmul.f32 %v79_v16, %v75_v9  ;;  %v34_v22 = vmul.f32 %v80_v17, %v76_v10 }
   0x7   :  { %6 = vsyncpa [#allocation3], 0  ;;  %v35_v23 = vmul.f32 %v81_v19, %v77_v11  ;;  %vm40_vm0 = vcmask 64512   ;;  %s105_s0 = smov [#allocation2]   ;;  %vm54_vm1 = vcmask 57344  }
   0x8   :  { %v36_v24 = vadd.f32 %v32_v20, %v28_v12  ;;  %v37_v25 = vadd.f32 %v33_v21, %v29_v13  ;;  %v38_v26 = vadd.f32 %v34_v22, %v30_v14  ;;  %s62_s9 = sshll.u32 %s105_s0, 4  ;;  %s63_s9 = int_to_ptr.vmem [resolvable:$true] %s62_s9 }
   0x9   :  { %v39_v27 = vadd.f32 %v35_v23, %v31_v18  ;;  %s83_s10 = scalar_lea.vmem %s63_s9, 16  ;;  %s87_s11 = scalar_lea.vmem %s63_s9, 32 }
   0xa   :  { %v41_v28 = vsel %vm40_vm0, %v36_v24, 0.0  ;;  %v42_v29 = vsel %vm40_vm0, %v37_v25, 0.0  ;;  %v44_v30 = vsel %vm40_vm0, %v38_v26, 0.0  ;;  %p84_p0 = scmp.ne.s32.totalorder %s63_s9, %s83_s10  ;;  %p88_p1 = scmp.lt.s32.totalorder %s63_s9, %s63_s9 }
   0xb   :  { %v43_v31 = vadd.f32 %v42_v29, %v41_v28  ;;  %v46_v32 = vsel %vm40_vm0, %v39_v27, 0.0  ;;  %p89_p2 = scmp.lt.s32.totalorder %s87_s11, %s83_s10 }
   0xd   :  { %v45_v33 = vadd.f32 %v44_v30, %v43_v31  ;;  %p90_p3 = por %p89_p2, %p88_p1 }
   0xf   :  { %v47_v34 = vadd.f32 %v46_v32, %v45_v33  ;;  %p91_p4 = pnand %p90_p3, %p84_p0 }
  0x11   :  { %v48_v35 = vrot.slane %v47_v34, 4 }
  0x13   :  { %v49_v36 = vadd.f32 %v48_v35, %v47_v34 }
  0x15   :  { %v50_v37 = vrot.slane %v49_v36, 2 }
  0x17   :  { %v51_v38 = vadd.f32 %v50_v37, %v49_v36 }
  0x19   :  { %v52_v39 = vrot.slane %v51_v38, 1 }
  0x1b   :  { %v53_v40 = vadd.f32 %v52_v39, %v51_v38 }
  0x1d   :  { %55 = vst.msk [vmem:[#allocation2] sm:$0x1] %vm54_vm1, %v53_v40 }
  0x1e   :  { %94 = shalt.err (!%p91_p4)
}
  0x1f   :  { %65 = dma.vmem_to_hbm [thread:$0]  %s63_s9, 16, %s168_s1, [#allocation3]  }
  0x20   :  { %103 = dma.done.wait [#allocation3], 16  }
  0x21   :  { %104 = vsyncadd [#allocation3], 4294967280 }
  0x22   :  { %69 = vsyncpa [#allocation3], 1 }

</bundles_post_ra>
